<compile_context>
chip_gen: v5e
topology: v5e:2x2
jax: 0.10.0
libtpu: 0.0.40
codegen_flags: <defaults>
</compile_context>

<pallas_src>
import functools

import jax
import jax.numpy as jnp
from jax.experimental import pallas as pl
from jax.experimental.pallas import tpu as pltpu

_OUT_PAD = 128   # lane-dense padded output width
_TRUE_OUT = 2    # real number of NSP classes


def _nsp_kernel(x_ref, w1_ref, b1_ref, w2_ref, b2_ref, o_ref, acc_ref):
    """One (batch-tile i, hidden-chunk j) grid step.

    acc += tanh(X[tile] @ W1[:, chunk] + b1[chunk]) @ W2p[chunk, :]
    On the last hidden chunk:  out[tile] = acc + b2p.
    """
    j = pl.program_id(1)

    @pl.when(j == 0)
    def _init():
        acc_ref[...] = jnp.zeros_like(acc_ref)

    # First matmul + tanh: bf16 (or f32) operands, f32 accumulation on the MXU.
    h = jnp.dot(x_ref[...], w1_ref[...], preferred_element_type=jnp.float32)
    h = jnp.tanh(h + b1_ref[...])            # b1 (1, th) broadcasts over rows

    # Partial second matmul over this hidden chunk (contraction over hidden).
    acc_ref[...] += jnp.dot(h.astype(w2_ref.dtype), w2_ref[...],
                            preferred_element_type=jnp.float32)

    @pl.when(j == pl.num_programs(1) - 1)
    def _finalize():
        o_ref[...] = (acc_ref[...] + b2_ref[...]).astype(o_ref.dtype)


def _round_up(x, m):
    return (x + m - 1) // m * m


def _vmem_capacity_bytes():
    try:
        return int(pltpu.get_tpu_info().vmem_capacity_bytes)
    except Exception:           # conservative fallback (v7x per-core VMEM)
        return 64 << 20


def _maybe_buffered_spec(shape, index_map, buffers=2):
    """BlockSpec with explicit buffer count; 2 = Pallas default (no kwarg)."""
    if buffers == 2:
        return pl.BlockSpec(shape, index_map)
    return pl.BlockSpec(shape, index_map, pipeline_mode=pl.Buffered(buffers))


def prepare_params(w1, b1, w2, b2, compute_dtype=jnp.bfloat16):
    """Pad the tiny (H, 2) output projection to 128 lanes and cast operands.

    Runs once, outside the per-call path (hoists the zero-pad + casts).
    Weights must already be laid out as (in_features, out_features).
    """
    num_hidden = w1.shape[0]
    out_dim = w2.shape[1]
    w2p = jnp.zeros((num_hidden, _OUT_PAD), jnp.float32).at[:, :out_dim].set(
        w2.astype(jnp.float32))
    b2p = jnp.zeros((1, _OUT_PAD), jnp.float32).at[:, :out_dim].set(
        b2.astype(jnp.float32))
    return (w1.astype(compute_dtype), b1.astype(jnp.float32),
            w2p.astype(compute_dtype), b2p)


@functools.partial(jax.jit, static_argnames=("block_b", "out_dtype"))
def next_sentence_pred(x, w1c, b1, w2p, b2p, *, block_b=512,
                       out_dtype=jnp.float32):
    """NSP forward pass -> (B, 2) logits.

    x: (B, H); w1c: (H, H) compute dtype; b1: (1, H) f32;
    w2p: (H, 128) compute dtype (zero-padded); b2p: (1, 128) f32 (zero-padded).
    out_dtype: bf16 halves the padded-output HBM writeback on mem-bound
    configs; default f32 matches the reference module.
    """
    B, H = x.shape
    compute_dtype = w1c.dtype
    itemsize = jnp.dtype(compute_dtype).itemsize
    out_itemsize = jnp.dtype(out_dtype).itemsize
    vmem_cap = _vmem_capacity_bytes()

    xc = x.astype(compute_dtype)

    # --- batch tile: as large as block_b, but keep >=2 grid steps so both
    # v7x TensorCores get work (megacore shards the "parallel" batch axis).
    tb = min(block_b, B)
    if tb == B and B >= 32:
        tb = _round_up(B // 2, 8)
    grid_b = pl.cdiv(B, tb)

    # --- hidden chunk: tile W1's output dim (= 2nd matmul contraction dim) so
    # W1 never has to be fully VMEM-resident.  Keep W1 buffering under ~1/4 of
    # this generation's VMEM.  th must divide H exactly (partial chunks would
    # pollute the accumulator with edge-padding garbage).
    budget = vmem_cap // 4
    if H % 128 != 0 or H * H * itemsize <= budget:
        th = H
    else:
        th = max(128, min(H, (budget // (2 * H * itemsize)) // 128 * 128))
        while th > 128 and H % th != 0:
            th -= 128
        if H % th != 0:
            th = H
    n_h = H // th

    # Grid-invariant weights (single hidden chunk) need only ONE VMEM buffer.
    wt_bufs = 1 if n_h == 1 else 2
    # Deeper X buffering for small-H, HBM-bound configs (e.g. v5e).
    x_bufs = 3 if (H <= 256 and grid_b >= 3) else 2

    vmem_est = (x_bufs * tb * H * itemsize               # X batch tiles
                + wt_bufs * H * th * itemsize            # W1 chunk(s)
                + wt_bufs * th * 4                       # b1 chunk(s) (f32)
                + wt_bufs * th * _OUT_PAD * itemsize     # W2 chunk(s) (padded)
                + _OUT_PAD * 4                           # b2 (padded, f32)
                + 2 * tb * _OUT_PAD * out_itemsize       # output tiles
                + tb * _OUT_PAD * 4                      # f32 accumulator
                + tb * th * 4)                           # f32 hidden temp
    vmem_limit = int(min(max(2 * vmem_est, 4 << 20), (vmem_cap * 3) // 4))

    in_specs = [
        _maybe_buffered_spec((tb, H), lambda i, j: (i, 0), x_bufs),          # X
        _maybe_buffered_spec((H, th), lambda i, j: (0, j), wt_bufs),         # W1
        _maybe_buffered_spec((1, th), lambda i, j: (0, j), wt_bufs),         # b1
        _maybe_buffered_spec((th, _OUT_PAD), lambda i, j: (j, 0), wt_bufs),  # W2p
        _maybe_buffered_spec((1, _OUT_PAD), lambda i, j: (0, 0), 1),         # b2p
    ]

    out_padded = pl.pallas_call(
        _nsp_kernel,
        out_shape=jax.ShapeDtypeStruct((B, _OUT_PAD), out_dtype),
        grid_spec=pltpu.PrefetchScalarGridSpec(
            num_scalar_prefetch=0,
            grid=(grid_b, n_h),
            in_specs=in_specs,
            out_specs=pl.BlockSpec((tb, _OUT_PAD), lambda i, j: (i, 0)),
            scratch_shapes=[pltpu.VMEM((tb, _OUT_PAD), jnp.float32)],
        ),
        compiler_params=pltpu.CompilerParams(
            dimension_semantics=("parallel", "arbitrary"),
            vmem_limit_bytes=vmem_limit,
        ),
    )(xc, w1c, b1, w2p, b2p)

    return out_padded[:, :_TRUE_OUT]


def init_params(key, num_hidden):
    """Deterministic init mirroring nn.Linear defaults (uniform +/- 1/sqrt(fan_in)).

    Weights are returned already transposed to (in_features, out_features).
    """
    k1, k2, k3, k4 = jax.random.split(key, 4)
    bound1 = 1.0 / jnp.sqrt(num_hidden)
    w1 = jax.random.uniform(k1, (num_hidden, num_hidden), jnp.float32,
                            -bound1, bound1)
    b1 = jax.random.uniform(k2, (1, num_hidden), jnp.float32, -bound1, bound1)
    w2 = jax.random.uniform(k3, (num_hidden, 2), jnp.float32, -bound1, bound1)
    b2 = jax.random.uniform(k4, (1, 2), jnp.float32, -bound1, bound1)
    return w1, b1, w2, b2


if __name__ == "__main__":
    # Tiny demo shapes for correctness only (real payoff needs B in the
    # thousands and H >= 128).
    batch, num_hidden = 8, 32
    key = jax.random.PRNGKey(0)
    kx, kp = jax.random.split(key)

    x = jax.random.normal(kx, (batch, num_hidden), jnp.float32)
    w1, b1, w2, b2 = init_params(kp, num_hidden)

    # --- default bf16-MXU path ---
    params_bf16 = prepare_params(w1, b1, w2, b2, compute_dtype=jnp.bfloat16)
    out = jax.block_until_ready(next_sentence_pred(x, *params_bf16))

    # Reference with matching bf16 rounding of matmul operands (f32 accum).
    xb = x.astype(jnp.bfloat16).astype(jnp.float32)
    w1b = w1.astype(jnp.bfloat16).astype(jnp.float32)
    w2b = w2.astype(jnp.bfloat16).astype(jnp.float32)
    h_ref = jnp.tanh(xb @ w1b + b1)
    ref = h_ref.astype(jnp.bfloat16).astype(jnp.float32) @ w2b + b2
    assert out.shape == (batch, 2)
    assert jnp.allclose(out, ref, atol=1e-2, rtol=1e-2), (
        f"bf16 path max abs err {jnp.max(jnp.abs(out - ref))}")

    # --- f32 precision path (documented knob) ---
    params_f32 = prepare_params(w1, b1, w2, b2, compute_dtype=jnp.float32)
    out_f32 = jax.block_until_ready(next_sentence_pred(x, *params_f32))
    ref_f32 = jnp.tanh(x @ w1 + b1) @ w2 + b2
    assert jnp.allclose(out_f32, ref_f32, atol=5e-3, rtol=5e-3), (
        f"f32 path max abs err {jnp.max(jnp.abs(out_f32 - ref_f32))}")

    print("KERNEL_OK")
</pallas_src>

<mosaic_0001>
module attributes {stable_mosaic.version = 11 : i64} {
  func.func @_nsp_kernel(%arg0: i32, %arg1: i32, %arg2: memref<8x32xbf16, #tpu.memory_space<vmem>>, %arg3: memref<32x32xbf16, #tpu.memory_space<vmem>>, %arg4: memref<1x32xf32, #tpu.memory_space<vmem>>, %arg5: memref<32x128xbf16, #tpu.memory_space<vmem>>, %arg6: memref<1x128xf32, #tpu.memory_space<vmem>>, %arg7: memref<8x128xf32, #tpu.memory_space<vmem>>, %arg8: memref<8x128xf32, #tpu.memory_space<vmem>>) attributes {dimension_semantics = [#tpu.dimension_semantics<parallel>, #tpu.dimension_semantics<arbitrary>], iteration_bounds = array<i64: 1, 1>, scalar_prefetch = 0 : i64, scratch_operands = 1 : i64, tpu.core_type = #tpu.core_type<tc>, window_params = [{transform_indices = @transform_0, window_bounds = array<i64: 8, 32>}, {pipeline_mode = #tpu.pipeline_mode<synchronous>, transform_indices = @transform_1, window_bounds = array<i64: 32, 32>}, {pipeline_mode = #tpu.pipeline_mode<synchronous>, transform_indices = @transform_2, window_bounds = array<i64: 1, 32>}, {pipeline_mode = #tpu.pipeline_mode<synchronous>, transform_indices = @transform_3, window_bounds = array<i64: 32, 128>}, {pipeline_mode = #tpu.pipeline_mode<synchronous>, transform_indices = @transform_4, window_bounds = array<i64: 1, 128>}, {transform_indices = @transform_5, window_bounds = array<i64: 8, 128>}]} {
    %c0_i32 = arith.constant 0 : i32
    %0 = arith.cmpi eq, %arg1, %c0_i32 : i32
    %1 = arith.extui %0 : i1 to i32
    %c0_i32_0 = arith.constant 0 : i32
    %2 = arith.cmpi ne, %1, %c0_i32_0 : i32
    scf.if %2 {
      %cst_15 = arith.constant 0.000000e+00 : f32
      %19 = vector.broadcast %cst_15 : f32 to vector<8x128xf32>
      %c0_16 = arith.constant 0 : index
      %c0_17 = arith.constant 0 : index
      %20 = vector.load %arg8[%c0_16, %c0_17] : memref<8x128xf32, #tpu.memory_space<vmem>>, vector<8x128xf32>
      tpu.vector_store %arg8[%c0_16, %c0_17], %19 {strides = array<i32>} : memref<8x128xf32, #tpu.memory_space<vmem>>, vector<8x128xf32>,
    } else {
    }
    %c0 = arith.constant 0 : index
    %c0_1 = arith.constant 0 : index
    %3 = vector.load %arg2[%c0, %c0_1] : memref<8x32xbf16, #tpu.memory_space<vmem>>, vector<8x32xbf16>
    %c0_2 = arith.constant 0 : index
    %c0_3 = arith.constant 0 : index
    %4 = vector.load %arg3[%c0_2, %c0_3] : memref<32x32xbf16, #tpu.memory_space<vmem>>, vector<32x32xbf16>
    %cst = arith.constant dense<0.000000e+00> : vector<8x32xf32>
    %5 = tpu.matmul %3, %4, %cst {dimension_numbers = #tpu.dot_dimension_numbers<[1], [0], [0], [1], [0, 0, 1, 1], [], []>} : vector<8x32xbf16>, vector<32x32xbf16>, vector<8x32xf32> -> vector<8x32xf32>
    %c0_4 = arith.constant 0 : index
    %c0_5 = arith.constant 0 : index
    %6 = vector.load %arg4[%c0_4, %c0_5] : memref<1x32xf32, #tpu.memory_space<vmem>>, vector<1x32xf32>
    %7 = vector.broadcast %6 : vector<1x32xf32> to vector<8x32xf32>
    %8 = arith.addf %5, %7 : vector<8x32xf32>
    %9 = math.tanh %8 : vector<8x32xf32>
    %c0_6 = arith.constant 0 : index
    %c0_7 = arith.constant 0 : index
    %10 = vector.load %arg8[%c0_6, %c0_7] : memref<8x128xf32, #tpu.memory_space<vmem>>, vector<8x128xf32>
    %11 = arith.truncf %9 : vector<8x32xf32> to vector<8x32xbf16>
    %c0_8 = arith.constant 0 : index
    %c0_9 = arith.constant 0 : index
    %12 = vector.load %arg5[%c0_8, %c0_9] : memref<32x128xbf16, #tpu.memory_space<vmem>>, vector<32x128xbf16>
    %cst_10 = arith.constant dense<0.000000e+00> : vector<8x128xf32>
    %13 = tpu.matmul %11, %12, %cst_10 {dimension_numbers = #tpu.dot_dimension_numbers<[1], [0], [0], [1], [0, 0, 1, 1], [], []>} : vector<8x32xbf16>, vector<32x128xbf16>, vector<8x128xf32> -> vector<8x128xf32>
    %14 = arith.addf %10, %13 : vector<8x128xf32>
    %c0_11 = arith.constant 0 : index
    %c0_12 = arith.constant 0 : index
    %15 = vector.load %arg8[%c0_11, %c0_12] : memref<8x128xf32, #tpu.memory_space<vmem>>, vector<8x128xf32>
    tpu.vector_store %arg8[%c0_11, %c0_12], %14 {strides = array<i32>} : memref<8x128xf32, #tpu.memory_space<vmem>>, vector<8x128xf32>,
    %c0_i32_13 = arith.constant 0 : i32
    %16 = arith.cmpi eq, %arg1, %c0_i32_13 : i32
    %17 = arith.extui %16 : i1 to i32
    %c0_i32_14 = arith.constant 0 : i32
    %18 = arith.cmpi ne, %17, %c0_i32_14 : i32
    scf.if %18 {
      %c0_15 = arith.constant 0 : index
      %c0_16 = arith.constant 0 : index
      %19 = vector.load %arg8[%c0_15, %c0_16] : memref<8x128xf32, #tpu.memory_space<vmem>>, vector<8x128xf32>
      %c0_17 = arith.constant 0 : index
      %c0_18 = arith.constant 0 : index
      %20 = vector.load %arg6[%c0_17, %c0_18] : memref<1x128xf32, #tpu.memory_space<vmem>>, vector<1x128xf32>
      %21 = vector.broadcast %20 : vector<1x128xf32> to vector<8x128xf32>
      %22 = arith.addf %19, %21 : vector<8x128xf32>
      %c0_19 = arith.constant 0 : index
      %c0_20 = arith.constant 0 : index
      %23 = vector.load %arg7[%c0_19, %c0_20] : memref<8x128xf32, #tpu.memory_space<vmem>>, vector<8x128xf32>
      tpu.vector_store %arg7[%c0_19, %c0_20], %22 {strides = array<i32>} : memref<8x128xf32, #tpu.memory_space<vmem>>, vector<8x128xf32>,
    } else {
    }
    return
  }
  func.func @transform_0(%arg0: i32, %arg1: i32) -> (i32, i32) {
    %c0_i32 = arith.constant 0 : i32
    %c0_i32_0 = arith.constant 0 : i32
    return %arg0, %c0_i32 : i32, i32
  }
  func.func @transform_1(%arg0: i32, %arg1: i32) -> (i32, i32) {
    %c0_i32 = arith.constant 0 : i32
    %c0_i32_0 = arith.constant 0 : i32
    return %c0_i32, %arg1 : i32, i32
  }
  func.func @transform_2(%arg0: i32, %arg1: i32) -> (i32, i32) {
    %c0_i32 = arith.constant 0 : i32
    %c0_i32_0 = arith.constant 0 : i32
    return %c0_i32, %arg1 : i32, i32
  }
  func.func @transform_3(%arg0: i32, %arg1: i32) -> (i32, i32) {
    %c0_i32 = arith.constant 0 : i32
    %c0_i32_0 = arith.constant 0 : i32
    return %arg1, %c0_i32 : i32, i32
  }
  func.func @transform_4(%arg0: i32, %arg1: i32) -> (i32, i32) {
    %c0_i32 = arith.constant 0 : i32
    %c0_i32_0 = arith.constant 0 : i32
    %c0_i32_1 = arith.constant 0 : i32
    return %c0_i32, %c0_i32_0 : i32, i32
  }
  func.func @transform_5(%arg0: i32, %arg1: i32) -> (i32, i32) {
    %c0_i32 = arith.constant 0 : i32
    %c0_i32_0 = arith.constant 0 : i32
    return %arg0, %c0_i32 : i32, i32
  }
}

</mosaic_0001>

<bundles_post_ra>
// kernel: next_sentence_pred.1
= control target key start
LH: loop header
LB: loop body
LE: loop exit
PB: predicated region body
PF: predicated region fallthrough
CT: control target
= control target key end

     0   :  { %10 = vsyncpa [#allocation4], 0  ;;  %s283_s0 = inlined_call_operand.vmem [shape: bf16[8,32], index: 0, kind: input, shape index: {}]   ;;  %s284_s1 = inlined_call_operand.hbm [shape: bf16[32,32], index: 1, kind: input, shape index: {}]   ;;  %s285_s2 = inlined_call_operand.vmem [shape: f32[1,32], index: 2, kind: input, shape index: {}]   ;;  %s286_s3 = inlined_call_operand.hbm [shape: bf16[32,128], index: 3, kind: input, shape index: {}]   ;;  %s287_s4 = inlined_call_operand.vmem [shape: f32[1,128], index: 4, kind: input, shape index: {}]   ;;  %s288_s5 = inlined_call_operand.vmem [shape: f32[8,128], index: 5, kind: output, shape index: {}]  }
   0x1   :  { %s18_s20 = sshll.u32 %s284_s1, 4  ;;  %s19_s20 = int_to_ptr.hbm [resolvable:$true] %s18_s20 }
   0x2   :  { %11 = vsyncpa [#allocation6], 0  ;;  %s231_s21 = smov [#allocation3]   ;;  %s33_s25 = sshll.u32 %s286_s3, 4  ;;  %s34_s25 = int_to_ptr.hbm [resolvable:$true] %s33_s25 }
   0x3   :  { %s20_s22 = sshll.u32 %s231_s21, 4  ;;  %s232_s26 = smov 64   ;;  %s21_s22 = int_to_ptr.vmem [resolvable:$true] %s20_s22 }
   0x4   :  { %s233_s27 = smov 4   ;;  %s234_s28 = smov [#allocation5]  }
   0x5   :  { %26 = dma.hbm_to_vmem [thread:$0]  %s19_s20, 256, %s21_s22, [#allocation4], %s232_s26, %s232_s26, %s233_s27  }
   0x6   :  { %s35_s29 = sshll.u32 %s234_s28, 4  ;;  %s36_s29 = int_to_ptr.vmem [resolvable:$true] %s35_s29 }
   0x7   :  { %41 = dma.hbm_to_vmem [thread:$0]  %s34_s25, 256, %s36_s29, [#allocation6], %s232_s26, %s232_s26, %s233_s27  }
   0x8   :  { %227 = dma.done.wait [#allocation4], 256  }
   0x9   :  { %228 = vsyncadd [#allocation4], 4294967040 }
   0xa   :  { %229 = dma.done.wait [#allocation6], 256  }
   0xb   :  { %230 = vsyncadd [#allocation6], 4294967040  ;;  %v168_v0 = vld [vmem:[#allocation3 + $0x8] sm:$0xff]  ;;  %v167_v1 = vld [vmem:[#allocation3] sm:$0xff]  ;;  %vm79_vm0 = vcmask 261120  }
   0xc   :  { %89 = vmatpush.bf16.msra.mxu0 %v168_v0  ;;  %v58_v2 = vld [vmem:[%s283_s0] sm:$0xf]  ;;  %v170_v3 = vld [vmem:[#allocation5 + $0x8] sm:$0xff]  ;;  %v169_v4 = vld [vmem:[#allocation5] sm:$0xff] }
   0xd   :  { %124 = vmatpush.bf16.msra.mxu1 %v170_v3  ;;  %v175_v5 = vld [vmem:[%s285_s2] ss:$0 sm:$0xff] }
   0xe   :  { %v176_v11 = vld [vmem:[%s287_s4] ss:$0 sm:$0xff] }
  0x10   :  { %90 = vmatpush.bf16.msra.mxu0 %v167_v1 }
  0x11   :  { %125 = vmatpush.bf16.msra.mxu1 %v169_v4 }
  0x13   :  { %157 = vmatmul.msk.bf16.vlgmr.msra.gmra.mxu0 %vm79_vm0, %v58_v2 }
  0x90   :  { %v92_v6 = vpop.f32.mrf.mxu0 }
  0x91   :  { %v93_v7 = vadd.f32 %v175_v5, %v92_v6 }
  0x93   :  { %177 = vtanh.f32 %v93_v7 }
  0x98   :  { %v94_v8 = vpop.f32.mrf.mxu0 }
  0x99   :  { %v178_v9 = vpop.eup %177 }
  0x9a   :  { %v98_v10 = vpack.c.bf16 %v178_v9, %v178_v9 }
  0x9c   :  { %166 = vmatmul.msk.bf16.vlgmr.msra.gmra.mxu1 %vm79_vm0, %v98_v10 }
 0x119   :  { %v127_v12 = vpop.f32.mrf.mxu1 }
 0x11a   :  { %v141_v13 = vadd.f32 %v176_v11, %v127_v12 }
 0x11c   :  { %142 = vst [vmem:[%s288_s5] sm:$0xff] %v141_v13 }
 0x121   :  { %v129_v14 = vpop.f32.mrf.mxu1 }
 0x122   :  { %147 = vsyncpa [#allocation4], 1 }
 0x123   :  { %148 = vsyncpa [#allocation6], 1 }

</bundles_post_ra>
